<compile_context>
chip_gen: v7x
topology: tpu7x:2x2x1
jax: 0.10.0
libtpu: 0.0.40
codegen_flags: <defaults>
</compile_context>

<pallas_src>
import functools

import jax
import jax.numpy as jnp
from jax.experimental import pallas as pl
from jax.experimental.pallas import tpu as pltpu

EPS = 1e-6
# Explicit scoped-VMEM budget: fits v7x's 64 MiB physical VMEM (v5e/v6e have 128 MiB).
_VMEM_LIMIT = 64 * 1024 * 1024


def _reduction_tile(total, target):
    """Tile for a *reduction* grid axis: must divide `total` exactly (padded garbage in a
    reduction block would contaminate the accumulator).  Returns the largest multiple of
    128 <= target that divides total, else the full axis."""
    if total <= target:
        return total
    t = (target // 128) * 128
    while t >= 128:
        if total % t == 0:
            return t
        t -= 128
    # TODO(synk): mask ragged reduction tiles in-kernel instead of falling back to untiled.
    return total


# ------------------------------------------------------------------
# Kernel 1: generic fused RMSNorm + matmul  ( [R,H] -> [R,N] )
#   grid = (row tiles, output-column tiles); H kept whole per row tile (needed for the norm).
#   Used for the QKV projection (N = 3H, bf16 out) and the unembed (N = V, f32 out).
#   Both grid axes are "parallel" (megacore); the per-column-tile norm recompute is a few
#   VPU ops per element and is negligible next to the tm*H*tn MXU work.
# ------------------------------------------------------------------
def _norm_matmul_kernel(x_ref, g_ref, w_ref, o_ref):
    x = x_ref[...]                                            # [tm, H] f32
    var = jnp.mean(x * x, axis=-1, keepdims=True)
    xn = (x * jax.lax.rsqrt(var + EPS) * g_ref[...]).astype(jnp.bfloat16)
    o_ref[...] = jnp.dot(xn, w_ref[...],
                         preferred_element_type=jnp.float32).astype(o_ref.dtype)


def norm_matmul(x2, g, w, *, out_dtype, row_tile=256, col_tile=512):
    R, H = x2.shape
    N = w.shape[1]
    tm = min(row_tile, R)
    tn = min(col_tile, N)
    grid = (pl.cdiv(R, tm), pl.cdiv(N, tn))
    return pl.pallas_call(
        _norm_matmul_kernel,
        out_shape=jax.ShapeDtypeStruct((R, N), out_dtype),
        grid=grid,
        in_specs=[
            pl.BlockSpec((tm, H), lambda i, j: (i, 0)),
            pl.BlockSpec((1, H), lambda i, j: (0, 0)),
            pl.BlockSpec((H, tn), lambda i, j: (0, j)),
        ],
        out_specs=pl.BlockSpec((tm, tn), lambda i, j: (i, j)),
        compiler_params=pltpu.CompilerParams(
            dimension_semantics=("parallel", "parallel"),
            vmem_limit_bytes=_VMEM_LIMIT),
    )(x2, g.reshape(1, H).astype(jnp.float32), w)


# ------------------------------------------------------------------
# Kernel 2: causal flash attention (online softmax)
#   q,k,v : [B*num_heads, S, head_dim] bf16 ; grid = (B*heads, q tiles, kv tiles)
# ------------------------------------------------------------------
def _flash_kernel(q_ref, k_ref, v_ref, o_ref, m_sc, l_sc, acc_sc,
                  *, scale, block_q, block_k):
    qi = pl.program_id(1)
    ki = pl.program_id(2)

    @pl.when(ki == 0)
    def _():
        m_sc[...] = jnp.full_like(m_sc, -jnp.inf)
        l_sc[...] = jnp.zeros_like(l_sc)
        acc_sc[...] = jnp.zeros_like(acc_sc)

    # Skip kv blocks entirely above the causal diagonal.
    @pl.when(ki * block_k <= qi * block_q + block_q - 1)
    def _():
        q = q_ref[0]                                          # [bq, hd] bf16
        k = k_ref[0]                                          # [bk, hd] bf16
        s = jax.lax.dot_general(q, k, (((1,), (1,)), ((), ())),
                                preferred_element_type=jnp.float32) * scale
        row = qi * block_q + jax.lax.broadcasted_iota(jnp.int32, s.shape, 0)
        col = ki * block_k + jax.lax.broadcasted_iota(jnp.int32, s.shape, 1)
        s = jnp.where(row >= col, s, -1e30)
        m_new = jnp.maximum(m_sc[...], jnp.max(s, axis=-1, keepdims=True))
        alpha = jnp.exp(m_sc[...] - m_new)
        p = jnp.exp(s - m_new)                                # masked entries underflow to 0
        l_sc[...] = alpha * l_sc[...] + jnp.sum(p, axis=-1, keepdims=True)
        acc_sc[...] = alpha * acc_sc[...] + jnp.dot(
            p.astype(v_ref.dtype), v_ref[0], preferred_element_type=jnp.float32)
        m_sc[...] = m_new

    @pl.when(ki == pl.num_programs(2) - 1)
    def _():
        inv_l = pl.reciprocal(l_sc[...], approx=True)         # EUP slot, ~free
        o_ref[0] = (acc_sc[...] * inv_l).astype(o_ref.dtype)


def flash_attention(q, k, v, *, q_tile=128, kv_tile=128):
    BH, S, hd = q.shape
    bq = min(q_tile, S)
    bk = _reduction_tile(S, kv_tile)
    scale = 1.0 / (hd ** 0.5)
    grid = (BH, pl.cdiv(S, bq), S // bk)
    kern = functools.partial(_flash_kernel, scale=scale, block_q=bq, block_k=bk)
    return pl.pallas_call(
        kern,
        out_shape=jax.ShapeDtypeStruct((BH, S, hd), jnp.bfloat16),
        grid=grid,
        in_specs=[
            pl.BlockSpec((1, bq, hd), lambda b, qi, ki: (b, qi, 0)),
            pl.BlockSpec((1, bk, hd), lambda b, qi, ki: (b, ki, 0)),
            pl.BlockSpec((1, bk, hd), lambda b, qi, ki: (b, ki, 0)),
        ],
        out_specs=pl.BlockSpec((1, bq, hd), lambda b, qi, ki: (b, qi, 0)),
        scratch_shapes=[
            pltpu.VMEM((bq, 1), jnp.float32),     # running max
            pltpu.VMEM((bq, 1), jnp.float32),     # running denom
            pltpu.VMEM((bq, hd), jnp.float32),    # output accumulator
        ],
        compiler_params=pltpu.CompilerParams(
            dimension_semantics=("parallel", "parallel", "arbitrary"),
            vmem_limit_bytes=_VMEM_LIMIT),
    )(q, k, v)


# ------------------------------------------------------------------
# Kernel 3: O projection (+ optional add_tensor) + residual, fused
#   outputs both attn_out (AttnWrapper.activations) and h = resid + attn_out
# ------------------------------------------------------------------
def _oproj_kernel(a_ref, w_ref, r_ref, *rest, has_add):
    if has_add:
        add_ref, attn_ref, h_ref = rest
    else:
        attn_ref, h_ref = rest
    y = jnp.dot(a_ref[...], w_ref[...], preferred_element_type=jnp.float32)
    if has_add:
        y = y + add_ref[...]
    attn_ref[...] = y.astype(attn_ref.dtype)
    h_ref[...] = (r_ref[...] + y).astype(h_ref.dtype)


def o_proj_residual(attn2, wo, resid2, add2=None, *, row_tile=256, col_tile=512):
    R, H = attn2.shape
    tm = min(row_tile, R)
    tn = min(col_tile, H)
    grid = (pl.cdiv(R, tm), pl.cdiv(H, tn))
    in_specs = [
        pl.BlockSpec((tm, H), lambda i, j: (i, 0)),
        pl.BlockSpec((H, tn), lambda i, j: (0, j)),
        pl.BlockSpec((tm, tn), lambda i, j: (i, j)),
    ]
    args = [attn2, wo, resid2]
    if add2 is not None:
        in_specs.append(pl.BlockSpec((tm, tn), lambda i, j: (i, j)))
        args.append(add2)
    kern = functools.partial(_oproj_kernel, has_add=add2 is not None)
    return pl.pallas_call(
        kern,
        out_shape=(jax.ShapeDtypeStruct((R, H), jnp.float32),
                   jax.ShapeDtypeStruct((R, H), jnp.float32)),
        grid=grid,
        in_specs=in_specs,
        out_specs=(pl.BlockSpec((tm, tn), lambda i, j: (i, j)),
                   pl.BlockSpec((tm, tn), lambda i, j: (i, j))),
        compiler_params=pltpu.CompilerParams(
            dimension_semantics=("parallel", "parallel"),
            vmem_limit_bytes=_VMEM_LIMIT),
    )(*args)


# ------------------------------------------------------------------
# Kernel 4: fused RMSNorm + SwiGLU MLP + residual
#   grid = (row tiles, intermediate-dim reduction tiles), f32 accumulator in VMEM.
#   The normed input is computed ONCE per row tile (j == 0) and cached in VMEM scratch.
#   The MLP residual equals its own (pre-norm) input, so no separate residual operand.
# ------------------------------------------------------------------
def _mlp_kernel(x_ref, g_ref, wg_ref, wu_ref, wd_ref, mlp_ref, out_ref, xn_ref, acc_ref):
    j = pl.program_id(1)

    @pl.when(j == 0)
    def _():
        x = x_ref[...]                                        # [tm, H] f32
        var = jnp.mean(x * x, axis=-1, keepdims=True)
        xn_ref[...] = (x * jax.lax.rsqrt(var + EPS) * g_ref[...]).astype(jnp.bfloat16)
        acc_ref[...] = jnp.zeros_like(acc_ref)

    xn = xn_ref[...]                                          # [tm, H] bf16 (reused per j)
    gate = jnp.dot(xn, wg_ref[...], preferred_element_type=jnp.float32)
    up = jnp.dot(xn, wu_ref[...], preferred_element_type=jnp.float32)
    act = (gate * jax.nn.sigmoid(gate) * up).astype(jnp.bfloat16)   # SiLU in f32, cast for MXU
    acc_ref[...] += jnp.dot(act, wd_ref[...], preferred_element_type=jnp.float32)

    @pl.when(j == pl.num_programs(1) - 1)
    def _():
        mlp_ref[...] = acc_ref[...].astype(mlp_ref.dtype)
        out_ref[...] = (x_ref[...] + acc_ref[...]).astype(out_ref.dtype)


def mlp_block(h2, g, wg, wu, wd, *, row_tile=256, inner_tile=512):
    R, H = h2.shape
    I = wg.shape[1]
    tm = min(row_tile, R)
    ti = _reduction_tile(I, inner_tile)
    grid = (pl.cdiv(R, tm), I // ti)
    return pl.pallas_call(
        _mlp_kernel,
        out_shape=(jax.ShapeDtypeStruct((R, H), jnp.float32),   # mlp output
                   jax.ShapeDtypeStruct((R, H), jnp.float32)),  # h + mlp (block output)
        grid=grid,
        in_specs=[
            pl.BlockSpec((tm, H), lambda i, j: (i, 0)),
            pl.BlockSpec((1, H), lambda i, j: (0, 0)),
            pl.BlockSpec((H, ti), lambda i, j: (0, j)),
            pl.BlockSpec((H, ti), lambda i, j: (0, j)),
            pl.BlockSpec((ti, H), lambda i, j: (j, 0)),
        ],
        out_specs=(pl.BlockSpec((tm, H), lambda i, j: (i, 0)),
                   pl.BlockSpec((tm, H), lambda i, j: (i, 0))),
        scratch_shapes=[pltpu.VMEM((tm, H), jnp.bfloat16),       # normed input (computed once)
                        pltpu.VMEM((tm, H), jnp.float32)],       # f32 accumulator
        compiler_params=pltpu.CompilerParams(
            dimension_semantics=("parallel", "arbitrary"),
            vmem_limit_bytes=_VMEM_LIMIT),
    )(h2, g.reshape(1, H).astype(jnp.float32), wg, wu, wd)


# ------------------------------------------------------------------
# BlockOutputWrapper.forward equivalent (stateless; cached attrs returned in `aux`)
# ------------------------------------------------------------------
def block_output_wrapper_forward(x, params, *, num_heads, permutation=None,
                                 lr_scale=1.0, active=True, save_all=False,
                                 attn_add_tensor=None,
                                 row_tile=256, col_tile=512, inner_tile=512,
                                 q_tile=128, kv_tile=128):
    B, S, H = x.shape
    hd = H // num_heads
    if permutation is not None:                 # input[:, permutation, :]
        x = x[:, permutation, :]
    inp = x.astype(jnp.float32)
    R = B * S
    x2 = inp.reshape(R, H)

    bf = jnp.bfloat16
    wqkv = jnp.concatenate([params["wq"], params["wk"], params["wv"]], axis=1).astype(bf)
    wo = params["wo"].astype(bf)
    wg = params["w_gate"].astype(bf)
    wu = params["w_up"].astype(bf)
    wd = params["w_down"].astype(bf)
    wun = params["unembed"].astype(bf)
    V = wun.shape[1]

    # 1) fused input RMSNorm + QKV projection (single streamed [H,3H] weight)
    qkv = norm_matmul(x2, params["input_ln"], wqkv, out_dtype=bf,
                      row_tile=row_tile, col_tile=col_tile)               # [R, 3H] bf16

    def split_heads(t):
        return (t.reshape(B, S, num_heads, hd).transpose(0, 2, 1, 3)
                 .reshape(B * num_heads, S, hd))

    qh = split_heads(qkv[:, :H])
    kh = split_heads(qkv[:, H:2 * H])
    vh = split_heads(qkv[:, 2 * H:])

    # 2) causal flash attention (online softmax, no S x S materialization)
    attn_h = flash_attention(qh, kh, vh, q_tile=q_tile, kv_tile=kv_tile)  # [B*NH, S, hd]
    attn2 = (attn_h.reshape(B, num_heads, S, hd).transpose(0, 2, 1, 3)
                   .reshape(R, H))

    # 3) O projection + optional add_tensor + residual, fused
    add2 = None
    if attn_add_tensor is not None:
        add2 = attn_add_tensor.reshape(R, H).astype(jnp.float32)
    attn_out2, h2 = o_proj_residual(attn2, wo, x2, add2,
                                    row_tile=row_tile, col_tile=col_tile)

    # 4) fused post-attention RMSNorm + SwiGLU MLP + residual
    mlp_out2, block_out2 = mlp_block(h2, params["post_attn_ln"], wg, wu, wd,
                                     row_tile=row_tile, inner_tile=inner_tile)

    output2 = block_out2
    if not active:
        output2 = x2
    if lr_scale != 1.0:
        output2 = x2 + lr_scale * (output2 - x2)

    # 5) final norm + unembed.  In save_all mode the PyTorch wrapper's
    #    attn_plus (= attn + input) equals h, and its recomputed mlp(post_ln(attn_plus))
    #    equals mlp_out, so we reuse them and batch ALL activations through ONE pass
    #    over the [H,V] unembed weight (streams from HBM once instead of 4x).
    if save_all:
        stacked = jnp.concatenate([output2, attn_out2, h2, mlp_out2], axis=0)   # [4R, H]
    else:
        stacked = output2
    logits = norm_matmul(stacked, params["final_norm"], wun, out_dtype=jnp.float32,
                         row_tile=row_tile, col_tile=col_tile)

    if save_all:
        lb, la, li_, lm = jnp.split(logits, 4, axis=0)
        aux = {
            "block_output_unembedded": lb.reshape(B, S, V),
            "attn_mech_output_unembedded": la.reshape(B, S, V),
            "intermediate_res_unembedded": li_.reshape(B, S, V),
            "mlp_output_unembedded": lm.reshape(B, S, V),
        }
    else:
        aux = {"block_output_unembedded": logits.reshape(B, S, V)}

    return output2.reshape(B, S, H), aux


# ------------------------------------------------------------------
# Pure-JAX reference (for correctness check)
# ------------------------------------------------------------------
def _ref_rmsnorm(x, g):
    return x * jax.lax.rsqrt(jnp.mean(x * x, axis=-1, keepdims=True) + EPS) * g


def _ref_attention(x, g, wq, wk, wv, wo, num_heads):
    B, S, H = x.shape
    hd = H // num_heads
    xn = _ref_rmsnorm(x, g)
    q = (xn @ wq).reshape(B, S, num_heads, hd)
    k = (xn @ wk).reshape(B, S, num_heads, hd)
    v = (xn @ wv).reshape(B, S, num_heads, hd)
    s = jnp.einsum("bqhd,bkhd->bhqk", q, k) / (hd ** 0.5)
    causal = jnp.tril(jnp.ones((S, S), bool))
    s = jnp.where(causal, s, -1e30)
    p = jax.nn.softmax(s, axis=-1)
    o = jnp.einsum("bhqk,bkhd->bqhd", p, v).reshape(B, S, H)
    return o @ wo


def _ref_mlp(x, g, wg, wu, wd):
    xn = _ref_rmsnorm(x, g)
    gate = xn @ wg
    return (gate * jax.nn.sigmoid(gate) * (xn @ wu)) @ wd


def _ref_forward(x, p, num_heads, permutation=None, lr_scale=1.0, active=True,
                 save_all=False, add_tensor=None):
    if permutation is not None:
        x = x[:, permutation, :]
    inp = x
    a = _ref_attention(inp, p["input_ln"], p["wq"], p["wk"], p["wv"], p["wo"], num_heads)
    if add_tensor is not None:
        a = a + add_tensor
    h = inp + a
    out = h + _ref_mlp(h, p["post_attn_ln"], p["w_gate"], p["w_up"], p["w_down"])
    if not active:
        out = inp
    if lr_scale != 1.0:
        out = inp + lr_scale * (out - inp)
    aux = {"block_output_unembedded": _ref_rmsnorm(out, p["final_norm"]) @ p["unembed"]}
    if save_all:
        aux["attn_mech_output_unembedded"] = _ref_rmsnorm(a, p["final_norm"]) @ p["unembed"]
        ap = a + inp
        aux["intermediate_res_unembedded"] = _ref_rmsnorm(ap, p["final_norm"]) @ p["unembed"]
        m2 = _ref_mlp(ap, p["post_attn_ln"], p["w_gate"], p["w_up"], p["w_down"])
        aux["mlp_output_unembedded"] = _ref_rmsnorm(m2, p["final_norm"]) @ p["unembed"]
    return out, aux


if __name__ == "__main__":
    B, S, H, NH, I, V = 2, 8, 32, 4, 64, 64
    key = jax.random.PRNGKey(0)
    ks = jax.random.split(key, 10)

    def init(k, shape, scale=0.05):
        return jax.random.normal(k, shape, jnp.float32) * scale

    params = dict(
        input_ln=jnp.ones((H,), jnp.float32),
        post_attn_ln=jnp.ones((H,), jnp.float32),
        final_norm=jnp.ones((H,), jnp.float32),
        wq=init(ks[0], (H, H)), wk=init(ks[1], (H, H)),
        wv=init(ks[2], (H, H)), wo=init(ks[3], (H, H)),
        w_gate=init(ks[4], (H, I)), w_up=init(ks[5], (H, I)), w_down=init(ks[6], (I, H)),
        unembed=init(ks[7], (H, V)),
    )
    x = jax.random.normal(ks[8], (B, S, H), jnp.float32)
    perm = jnp.arange(S)[::-1]                  # exercise the permutation path

    # --- case 1: permutation + lr_scale + save_all ---
    out, aux = block_output_wrapper_forward(
        x, params, num_heads=NH, permutation=perm,
        lr_scale=0.5, active=True, save_all=True)
    jax.block_until_ready(out)
    jax.block_until_ready(aux["block_output_unembedded"])

    ref_out, ref_aux = _ref_forward(x, params, NH, permutation=perm, lr_scale=0.5,
                                    active=True, save_all=True)
    assert out.shape == (B, S, H)
    assert aux["block_output_unembedded"].shape == (B, S, V)
    assert jnp.allclose(out, ref_out, atol=2e-2, rtol=2e-2)
    for kname in ref_aux:
        assert jnp.allclose(aux[kname], ref_aux[kname], atol=2e-2, rtol=2e-2), kname

    # --- case 2: attention add_tensor path, no save_all ---
    add_t = init(ks[9], (B, S, H), scale=0.1)
    out2, aux2 = block_output_wrapper_forward(
        x, params, num_heads=NH, attn_add_tensor=add_t, save_all=False)
    jax.block_until_ready(out2)
    ref_out2, ref_aux2 = _ref_forward(x, params, NH, add_tensor=add_t)
    assert jnp.allclose(out2, ref_out2, atol=2e-2, rtol=2e-2)
    assert jnp.allclose(aux2["block_output_unembedded"],
                        ref_aux2["block_output_unembedded"], atol=2e-2, rtol=2e-2)

    print("KERNEL_OK")
</pallas_src>

<mosaic_0001>
module attributes {stable_mosaic.version = 11 : i64} {
  func.func @_norm_matmul_kernel(%arg0: i32, %arg1: i32, %arg2: memref<16x32xf32, #tpu.memory_space<vmem>>, %arg3: memref<1x32xf32, #tpu.memory_space<vmem>>, %arg4: memref<32x96xbf16, #tpu.memory_space<vmem>>, %arg5: memref<16x96xbf16, #tpu.memory_space<vmem>>) attributes {dimension_semantics = [#tpu.dimension_semantics<parallel>, #tpu.dimension_semantics<parallel>], iteration_bounds = array<i64: 1, 1>, scalar_prefetch = 0 : i64, scratch_operands = 0 : i64, tpu.core_type = #tpu.core_type<tc>, window_params = [{transform_indices = @transform_0, window_bounds = array<i64: 16, 32>}, {pipeline_mode = #tpu.pipeline_mode<synchronous>, transform_indices = @transform_1, window_bounds = array<i64: 1, 32>}, {transform_indices = @transform_2, window_bounds = array<i64: 32, 96>}, {transform_indices = @transform_3, window_bounds = array<i64: 16, 96>}]} {
    %c0 = arith.constant 0 : index
    %c0_0 = arith.constant 0 : index
    %0 = vector.load %arg2[%c0, %c0_0] : memref<16x32xf32, #tpu.memory_space<vmem>>, vector<16x32xf32>
    %1 = arith.mulf %0, %0 : vector<16x32xf32>
    %cst = arith.constant dense<0.000000e+00> : vector<16xf32>
    %2 = vector.multi_reduction <add>, %1, %cst [1] : vector<16x32xf32> to vector<16xf32>
    %3 = vector.shape_cast %2 : vector<16xf32> to vector<16x1xf32>
    %cst_1 = arith.constant 3.200000e+01 : f32
    %4 = vector.broadcast %cst_1 : f32 to vector<16x1xf32>
    %5 = arith.divf %3, %4 : vector<16x1xf32>
    %cst_2 = arith.constant 9.99999997E-7 : f32
    %6 = vector.broadcast %cst_2 : f32 to vector<16x1xf32>
    %7 = arith.addf %5, %6 : vector<16x1xf32>
    %8 = math.rsqrt %7 : vector<16x1xf32>
    %9 = vector.broadcast %8 : vector<16x1xf32> to vector<16x32xf32>
    %10 = arith.mulf %0, %9 : vector<16x32xf32>
    %c0_3 = arith.constant 0 : index
    %c0_4 = arith.constant 0 : index
    %11 = vector.load %arg3[%c0_3, %c0_4] : memref<1x32xf32, #tpu.memory_space<vmem>>, vector<1x32xf32>
    %12 = vector.broadcast %11 : vector<1x32xf32> to vector<16x32xf32>
    %13 = arith.mulf %10, %12 : vector<16x32xf32>
    %14 = arith.truncf %13 : vector<16x32xf32> to vector<16x32xbf16>
    %c0_5 = arith.constant 0 : index
    %c0_6 = arith.constant 0 : index
    %15 = vector.load %arg4[%c0_5, %c0_6] : memref<32x96xbf16, #tpu.memory_space<vmem>>, vector<32x96xbf16>
    %cst_7 = arith.constant dense<0.000000e+00> : vector<16x96xf32>
    %16 = tpu.matmul %14, %15, %cst_7 {dimension_numbers = #tpu.dot_dimension_numbers<[1], [0], [0], [1], [0, 0, 1, 1], [], []>} : vector<16x32xbf16>, vector<32x96xbf16>, vector<16x96xf32> -> vector<16x96xf32>
    %17 = arith.truncf %16 : vector<16x96xf32> to vector<16x96xbf16>
    %c0_8 = arith.constant 0 : index
    %c0_9 = arith.constant 0 : index
    %18 = vector.load %arg5[%c0_8, %c0_9] : memref<16x96xbf16, #tpu.memory_space<vmem>>, vector<16x96xbf16>
    tpu.vector_store %arg5[%c0_8, %c0_9], %17 {strides = array<i32>} : memref<16x96xbf16, #tpu.memory_space<vmem>>, vector<16x96xbf16>,
    return
  }
  func.func @transform_0(%arg0: i32, %arg1: i32) -> (i32, i32) {
    %c0_i32 = arith.constant 0 : i32
    %c0_i32_0 = arith.constant 0 : i32
    return %arg0, %c0_i32 : i32, i32
  }
  func.func @transform_1(%arg0: i32, %arg1: i32) -> (i32, i32) {
    %c0_i32 = arith.constant 0 : i32
    %c0_i32_0 = arith.constant 0 : i32
    %c0_i32_1 = arith.constant 0 : i32
    return %c0_i32, %c0_i32_0 : i32, i32
  }
  func.func @transform_2(%arg0: i32, %arg1: i32) -> (i32, i32) {
    %c0_i32 = arith.constant 0 : i32
    %c0_i32_0 = arith.constant 0 : i32
    return %c0_i32, %arg1 : i32, i32
  }
  func.func @transform_3(%arg0: i32, %arg1: i32) -> (i32, i32) {
    %c0_i32 = arith.constant 0 : i32
    return %arg0, %arg1 : i32, i32
  }
}

</mosaic_0001>

<bundles_post_ra>
// kernel: tpu_custom_call.1
= control target key start
LH: loop header
LB: loop body
LE: loop exit
PB: predicated region body
PF: predicated region fallthrough
CT: control target
= control target key end

     0   :  { %8 = vsyncpa [#allocation3], 0  ;;  %s397_s0 = inlined_call_operand.hbm [shape: f32[16,32], index: 0, kind: input, shape index: {}]   ;;  %s398_s1 = inlined_call_operand.hbm [shape: f32[1,32], index: 1, kind: input, shape index: {}]   ;;  %s399_s2 = inlined_call_operand.hbm [shape: bf16[32,96], index: 2, kind: input, shape index: {}]   ;;  %s400_s3 = inlined_call_operand.hbm [shape: bf16[16,96], index: 3, kind: output, shape index: {}]  }
   0x1   :  { %9 = vsyncpa [#allocation6], 0 }
   0x2   :  { %10 = vsyncpa [#allocation4], 0  ;;  %s303_s12 = smov [#allocation5]   ;;  %s304_s14 = smov [#allocation2]  }
   0x3   :  { %s29_s13 = sshll.u32 %s303_s12, 4  ;;  %s16_s15 = sshll.u32 %s304_s14, 4  ;;  %s30_s13 = int_to_ptr.vmem [resolvable:$true] %s29_s13  ;;  %s333_s15 = int_to_ptr.vmem [resolvable:$true] %s16_s15 }
   0x4   :  { %s209_s18 = scalar_lea.hbm %s398_s1, 16 }
   0x5   :  { %p210_p0 = scmp.ne.s32.totalorder %s398_s1, %s209_s18  ;;  %p213_p1 = scmp.lt.u32.totalorder %s209_s18, %s398_s1 }
   0x7   :  { %p215_p2 = pnand %p213_p1, %p210_p0 }
   0x9   :  { %218 = shalt.err (!%p215_p2)
}
   0xa   :  { %s219_s23 = scalar_lea.vmem %s30_s13, 16  ;;  %s223_s24 = scalar_lea.vmem %s30_s13, 32 }
   0xb   :  { %p220_p3 = scmp.ne.s32.totalorder %s30_s13, %s219_s23  ;;  %p224_p4 = scmp.lt.s32.totalorder %s30_s13, %s30_s13 }
   0xc   :  { %p225_p5 = scmp.lt.s32.totalorder %s223_s24, %s219_s23 }
   0xe   :  { %p226_p6 = por %p225_p5, %p224_p4 }
  0x10   :  { %p227_p7 = pnand %p226_p6, %p220_p3 }
  0x12   :  { %230 = shalt.err (!%p227_p7)
}
  0x13   :  { %32 = dma.hbm_to_vmem [thread:$0]  %s398_s1, 16, %s30_s13, [#allocation6]  }
  0x14   :  { %s231_s29 = scalar_lea.hbm %s397_s0, 256 }
  0x15   :  { %p232_p8 = scmp.ne.s32.totalorder %s397_s0, %s231_s29  ;;  %p235_p9 = scmp.lt.u32.totalorder %s231_s29, %s397_s0 }
  0x17   :  { %p237_p10 = pnand %p235_p9, %p232_p8 }
  0x19   :  { %240 = shalt.err (!%p237_p10)
}
  0x1a   :  { %s241_s7 = scalar_lea.vmem %s333_s15, 256  ;;  %p246_p12 = scmp.lt.s32.totalorder %s333_s15, %s333_s15 }
  0x1b   :  { %p242_p11 = scmp.ne.s32.totalorder %s333_s15, %s241_s7  ;;  %p247_p13 = scmp.lt.s32.totalorder %s241_s7, %s241_s7 }
  0x1d   :  { %p248_p0 = por %p247_p13, %p246_p12 }
  0x1f   :  { %p249_p1 = pnand %p248_p0, %p242_p11 }
  0x21   :  { %252 = shalt.err (!%p249_p1)
}
  0x22   :  { %s305_s1 = smov 128   ;;  %s306_s8 = smov 8  }
  0x23   :  { %22 = dma.hbm_to_vmem [thread:$0]  %s397_s0, 256, %s333_s15, [#allocation3], %s305_s1, %s305_s1, %s306_s8  }
  0x24   :  { %s307_s11 = smov [#allocation7]   ;;  %s253_s16 = scalar_lea.hbm %s399_s2, 256 }
  0x25   :  { %s38_s12 = sshll.u32 %s307_s11, 4  ;;  %p254_p2 = scmp.ne.s32.totalorder %s399_s2, %s253_s16  ;;  %s39_s12 = int_to_ptr.vmem [resolvable:$true] %s38_s12 }
  0x26   :  { %p257_p3 = scmp.lt.u32.totalorder %s253_s16, %s399_s2 }
  0x28   :  { %p259_p4 = pnand %p257_p3, %p254_p2 }
  0x2a   :  { %262 = shalt.err (!%p259_p4)
}
  0x2b   :  { %s263_s21 = scalar_lea.vmem %s39_s12, 256  ;;  %p268_p6 = scmp.lt.s32.totalorder %s39_s12, %s39_s12 }
  0x2c   :  { %p264_p5 = scmp.ne.s32.totalorder %s39_s12, %s263_s21  ;;  %p269_p7 = scmp.lt.s32.totalorder %s263_s21, %s263_s21 }
  0x2e   :  { %p270_p8 = por %p269_p7, %p268_p6 }
  0x30   :  { %p271_p9 = pnand %p270_p8, %p264_p5 }
  0x32   :  { %274 = shalt.err (!%p271_p9)
}
  0x33   :  { %s308_s0 = smov 64   ;;  %s309_s15 = smov 4  }
  0x34   :  { %44 = dma.hbm_to_vmem [thread:$0]  %s399_s2, 256, %s39_s12, [#allocation6], %s308_s0, %s308_s0, %s309_s15  }
  0x35   :  { %297 = dma.done.wait [#allocation3], 256  }
  0x36   :  { %298 = vsyncadd [#allocation3], 4294967040 }
  0x37   :  { %299 = dma.done.wait [#allocation6], 272  }
  0x38   :  { %300 = vsyncadd [#allocation6], 4294967024  ;;  %v55_v0 = vld [vmem:[#allocation2] sm:$0xff]  ;;  %vm59_vm0 = vcmask 261120   ;;  %v56_v1 = vld [vmem:[#allocation2 + $0x8] sm:$0xff]  ;;  %v310_v7 = vmov 0.0  }
  0x39   :  { %v57_v2 = vmul.f32 %v55_v0, %v55_v0  ;;  %v58_v3 = vmul.f32 %v56_v1, %v56_v1  ;;  %v203_v6 = vld [vmem:[#allocation7] sm:$0xff]   ;;  %185 = vmatprep.subr.bf16.mxu0 %v310_v7  ;;  %vm311_vm1 = vmmov 0   ;;  %v204_v8 = vld [vmem:[#allocation7 + $0x8] sm:$0xff]   ;;  %v174_v18 = vld [vmem:[#allocation5] ss:$0 sm:$0xff]  ;;  %vm153_vm2 = vcmask 781312  }
  0x3a   :  { %189 = vmatprep.mubr.msk.bf16.mxu0 %vm311_vm1, %v310_v7  ;;  %186 = vmatpush3.bf16.msra.mxu0 %v203_v6  ;;  %s312_s2 = smov [#allocation8]  }
  0x3b   :  { %v60_v4 = vsel %vm59_vm0, %v57_v2, 0.0  ;;  %v63_v5 = vsel %vm59_vm0, %v58_v3, 0.0  ;;  %187 = vmatprep.subr.bf16.mxu0 %v310_v7  ;;  %s161_s24 = sshll.u32 %s312_s2, 4  ;;  %s162_s24 = int_to_ptr.vmem [resolvable:$true] %s161_s24 }
  0x3c   :  { %61 = vadd.xlane.f32.xlu0 %v60_v4  ;;  %s275_s25 = scalar_lea.vmem %s162_s24, 128  ;;  %p280_p11 = scmp.lt.s32.totalorder %s162_s24, %s162_s24 }
  0x3d   :  { %p276_p10 = scmp.ne.s32.totalorder %s162_s24, %s275_s25  ;;  %p281_p12 = scmp.lt.s32.totalorder %s275_s25, %s275_s25 }
  0x3e   :  { %188 = vmatpush3.bf16.msra.mxu0 %v204_v8 }
  0x3f   :  { %p282_p13 = por %p281_p12, %p280_p11 }
  0x40   :  { %64 = vadd.xlane.f32.xlu0 %v63_v5 }
  0x41   :  { %p283_p0 = pnand %p282_p13, %p276_p10 }
  0xc9   :  { %v62_v9 = vpop.xlane.xlu0 %61 }
  0xca   :  { %v67_v10 = vmul.f32 0.03125, %v62_v9 }
  0xcc   :  { %v69_v11 = vadd.f32 1e-06, %v67_v10 }
  0xcd   :  { %v65_v12 = vpop.xlane.xlu0 %64 }
  0xce   :  { %205 = vrsqrt.f32 %v69_v11  ;;  %v68_v13 = vmul.f32 0.03125, %v65_v12 }
  0xd0   :  { %v70_v14 = vadd.f32 1e-06, %v68_v13 }
  0xd2   :  { %207 = vrsqrt.f32 %v70_v14 }
  0xd8   :  { %v206_v15 = vpop.eup %205 }
  0xd9   :  { %v73_v16 = vmul.f32 %v206_v15, %v55_v0 }
  0xdb   :  { %v82_v20 = vmul.f32 %v174_v18, %v73_v16 }
  0xdc   :  { %v208_v17 = vpop.eup %207 }
  0xdd   :  { %v74_v19 = vmul.f32 %v208_v17, %v56_v1 }
  0xdf   :  { %v83_v21 = vmul.f32 %v174_v18, %v74_v19 }
  0xe1   :  { %v84_v22 = vpack.c.bf16 %v83_v21, %v82_v20 }
  0xe3   :  { %190 = vmatmul.mubr.msk.bf16.vlgmr.msra.gmra.mrb[0].mxu0 %vm59_vm0, %v84_v22 }
 0x1b6   :  { %v138_v23 = vpop.f32.mrb[0].mxu0 }
 0x1b7   :  { %v180_v24 = vpack.c.bf16 %v138_v23, %v138_v23  ;;  %v191_v25 = vpop.f32.mrb[1].mxu0 }
 0x1b8   :  { %v141_v26 = vpop.f32.mrb[2].mxu0 }
 0x1b9   :  { %v181_v27 = vpack.c.bf16 %v141_v26, %v141_v26  ;;  %v192_v28 = vpop.f32.mrb[3].mxu0  ;;  %154 = vst.msk [vmem:[#allocation8] sm:$0xf] %vm153_vm2, %v180_v24 }
 0x1bb   :  { %155 = vst.msk [vmem:[#allocation8 + $0x4] sm:$0xf] %vm153_vm2, %v181_v27 }
 0x1bc   :  { %286 = shalt.err (!%p283_p0)
}
 0x1bd   :  { %s287_s28 = scalar_lea.hbm %s400_s3, 128 }
 0x1be   :  { %p288_p1 = scmp.ne.s32.totalorder %s400_s3, %s287_s28  ;;  %p291_p2 = scmp.lt.u32.totalorder %s287_s28, %s400_s3 }
 0x1c0   :  { %p293_p3 = pnand %p291_p2, %p288_p1 }
 0x1c2   :  { %296 = shalt.err (!%p293_p3)
}
 0x1c3   :  { %167 = dma.vmem_to_hbm [thread:$0]  %s162_s24, 128, %s400_s3, [#allocation4], %s308_s0, %s308_s0, %s309_s15  }
 0x1c4   :  { %301 = dma.done.wait [#allocation4], 128  }
 0x1c5   :  { %302 = vsyncadd [#allocation4], 4294967168 }
 0x1c6   :  { %171 = vsyncpa [#allocation3], 1 }
 0x1c7   :  { %172 = vsyncpa [#allocation6], 1 }
 0x1c8   :  { %173 = vsyncpa [#allocation4], 1 }

</bundles_post_ra>
